<compile_context>
chip_gen: v7x
topology: tpu7x:2x2x1
jax: 0.10.0
libtpu: 0.0.40
codegen_flags: <defaults>
</compile_context>

<pallas_src>
import functools

import jax
import jax.numpy as jnp
import numpy as np
from jax import lax
from jax.experimental import pallas as pl
from jax.experimental.pallas import tpu as pltpu


def _cls_attention_kernel(x_ref, wq_ref, wkv_ref, o_ref, *, num_classes,
                          num_heads, head_dim):
    """Bt batch elements per step: fused lane-dense QKV projection + masked
    cross attention from the `num_classes` class tokens to the other tokens."""
    nc, H, Dh = num_classes, num_heads, head_dim
    Bt, N, C = x_ref.shape
    # Class-token rows, padded up to a sublane multiple (cheap extra rows).
    ncp = min(N, ((nc + 7) // 8) * 8)

    x = x_ref[...]                                           # (Bt, N, C) bf16

    # ---- fused, lane-dense projections (dominant MXU work) -----------------
    xf = x.reshape(Bt * N, C)
    kv = jnp.dot(xf, wkv_ref[...],
                 preferred_element_type=jnp.float32)         # (Bt*N, 2C)
    kv = kv.reshape(Bt, N, 2 * C)

    xq = x[:, :ncp, :].reshape(Bt * ncp, C)
    q = jnp.dot(xq, wq_ref[...],                             # scale pre-folded
                preferred_element_type=jnp.float32)          # (Bt*ncp, C)
    q = q.reshape(Bt, ncp, C)[:, :nc, :]                     # (Bt, nc, C)

    # The module uses x[:, nc:] for k/v; we computed k/v for all N tokens
    # (avoids an unaligned sublane slice) and mask the class-token key
    # positions out of the softmax instead — mathematically identical.
    key_pos = lax.broadcasted_iota(jnp.int32, (Bt, nc, N), 2)
    key_mask = key_pos < nc

    # ---- per-head attention (tiny FLOPs: nc queries only) ------------------
    outs = []
    for h in range(H):                                       # static unroll
        lo = h * Dh
        q_h = q[:, :, lo:lo + Dh]                            # (Bt, nc, Dh)
        k_h = kv[:, :, lo:lo + Dh]                           # (Bt, N, Dh)
        v_h = kv[:, :, C + lo:C + lo + Dh]                   # (Bt, N, Dh)

        s = jnp.einsum("bqd,bkd->bqk", q_h, k_h,
                       preferred_element_type=jnp.float32)   # (Bt, nc, N)
        s = jnp.where(key_mask, -1e30, s)

        m = jnp.max(s, axis=-1, keepdims=True)
        e = jnp.exp(s - m)
        denom = jnp.sum(e, axis=-1, keepdims=True)
        p = e * pl.reciprocal(denom, approx=True)
        # TODO(synk): attn_drop / proj_drop are nn.Dropout -> identity in eval
        # mode; training-mode dropout (and the unused self.proj) not implemented.

        outs.append(jnp.einsum("bqk,bkd->bqd", p, v_h,
                               preferred_element_type=jnp.float32))

    # Lane-dense (Bt, nc, C) store — single full-lane slab, no wrapper relayout.
    o_ref[...] = jnp.concatenate(outs, axis=-1).astype(o_ref.dtype)


def _pick_batch_tile(B, N):
    """Fuse batches so the matmul M dim approaches 256 rows, but keep >= 2
    parallel grid steps whenever B >= 2 (v7x has two TensorCores)."""
    want = max(1, (256 + N - 1) // N)
    min_steps = 2 if B >= 2 else 1
    best = 1
    for cand in range(1, B + 1):
        if B % cand == 0 and cand <= want and B // cand >= min_steps:
            best = cand
    return best


def learned_aggregation_multi(x, params, *, num_heads, num_classes,
                              batch_tile=None):
    """x: (B, N, C).  params['wq'|'wk'|'wv']: (C, C) stored (in, out) so that
    y = x @ W (i.e. the transpose of torch's nn.Linear.weight)."""
    B, N, C = x.shape
    H = num_heads
    nc = num_classes
    assert C % H == 0, "dim must be divisible by num_heads"
    assert N > nc, "need at least one non-class token for k/v"
    Dh = C // H
    scale = Dh ** -0.5

    if batch_tile is None:
        batch_tile = _pick_batch_tile(B, N)
    Bt = batch_tile
    assert B % Bt == 0

    # Fold the attention scale into Wq; pack Wk/Wv into one (C, 2C) slab.
    # Cast inputs/weights to bf16 (native MXU input); dots accumulate in f32.
    wq = (params["wq"] * scale).astype(jnp.bfloat16)                  # (C, C)
    wkv = jnp.concatenate([params["wk"], params["wv"]],
                          axis=-1).astype(jnp.bfloat16)               # (C, 2C)
    x_bf = x.astype(jnp.bfloat16)

    kernel = functools.partial(_cls_attention_kernel, num_classes=nc,
                               num_heads=H, head_dim=Dh)

    out = pl.pallas_call(
        kernel,
        grid=(B // Bt,),
        in_specs=[
            pl.BlockSpec((Bt, N, C), lambda b: (b, 0, 0)),      # x tile
            pl.BlockSpec((C, C), lambda b: (0, 0)),             # Wq (resident)
            pl.BlockSpec((C, 2 * C), lambda b: (0, 0)),         # Wkv (resident)
        ],
        out_specs=pl.BlockSpec((Bt, nc, C), lambda b: (b, 0, 0)),
        out_shape=jax.ShapeDtypeStruct((B, nc, C), jnp.float32),
        compiler_params=pltpu.CompilerParams(
            dimension_semantics=("parallel",),
            vmem_limit_bytes=48 * 1024 * 1024),
    )(x_bf, wq, wkv)

    return out


def reference_forward(x, params, *, num_heads, num_classes):
    """Pure-JAX transcription of the PyTorch forward (eval mode)."""
    wq, wk, wv = params["wq"], params["wk"], params["wv"]
    B, N, C = x.shape
    H, nc = num_heads, num_classes
    Dh = C // H
    scale = Dh ** -0.5

    q = (x[:, :nc] @ wq).reshape(B, nc, H, Dh).transpose(0, 2, 1, 3) * scale
    k = (x[:, nc:] @ wk).reshape(B, N - nc, H, Dh).transpose(0, 2, 1, 3)
    v = (x[:, nc:] @ wv).reshape(B, N - nc, H, Dh).transpose(0, 2, 1, 3)

    attn = jax.nn.softmax(q @ jnp.swapaxes(k, -1, -2), axis=-1)  # (B,H,nc,N-nc)
    return (attn @ v).transpose(0, 2, 1, 3).reshape(B, nc, C)


if __name__ == "__main__":
    B, C, H, NC, N = 2, 32, 8, 3, 16      # dim=32, heads=8, num_classes=3, seq=16

    key = jax.random.PRNGKey(0)
    kx, kq, kk, kv = jax.random.split(key, 4)
    x = jax.random.normal(kx, (B, N, C), dtype=jnp.float32)
    params = {
        "wq": jax.random.normal(kq, (C, C), jnp.float32) / jnp.sqrt(C),
        "wk": jax.random.normal(kk, (C, C), jnp.float32) / jnp.sqrt(C),
        "wv": jax.random.normal(kv, (C, C), jnp.float32) / jnp.sqrt(C),
    }

    out = learned_aggregation_multi(x, params, num_heads=H, num_classes=NC)
    out = jax.block_until_ready(out)

    ref = reference_forward(x, params, num_heads=H, num_classes=NC)
    np.testing.assert_allclose(np.asarray(out), np.asarray(ref),
                               rtol=2e-2, atol=2e-2)
    print("KERNEL_OK")
</pallas_src>

<mosaic_0001>
module attributes {stable_mosaic.version = 11 : i64} {
  func.func @_cls_attention_kernel(%arg0: i32, %arg1: memref<1x16x32xbf16, #tpu.memory_space<vmem>>, %arg2: memref<32x32xbf16, #tpu.memory_space<vmem>>, %arg3: memref<32x64xbf16, #tpu.memory_space<vmem>>, %arg4: memref<1x3x32xf32, #tpu.memory_space<vmem>>) attributes {dimension_semantics = [#tpu.dimension_semantics<parallel>], iteration_bounds = array<i64: 2>, scalar_prefetch = 0 : i64, scratch_operands = 0 : i64, tpu.core_type = #tpu.core_type<tc>, window_params = [{transform_indices = @transform_0, window_bounds = array<i64: 1, 16, 32>}, {pipeline_mode = #tpu.pipeline_mode<synchronous>, transform_indices = @transform_1, window_bounds = array<i64: 32, 32>}, {pipeline_mode = #tpu.pipeline_mode<synchronous>, transform_indices = @transform_2, window_bounds = array<i64: 32, 64>}, {transform_indices = @transform_3, window_bounds = array<i64: 1, 3, 32>}]} {
    %c0 = arith.constant 0 : index
    %c0_0 = arith.constant 0 : index
    %c0_1 = arith.constant 0 : index
    %0 = vector.load %arg1[%c0, %c0_0, %c0_1] : memref<1x16x32xbf16, #tpu.memory_space<vmem>>, vector<1x16x32xbf16>
    %1 = vector.shape_cast %0 : vector<1x16x32xbf16> to vector<16x32xbf16>
    %c0_2 = arith.constant 0 : index
    %c0_3 = arith.constant 0 : index
    %2 = vector.load %arg3[%c0_2, %c0_3] : memref<32x64xbf16, #tpu.memory_space<vmem>>, vector<32x64xbf16>
    %cst = arith.constant dense<0.000000e+00> : vector<16x64xf32>
    %3 = tpu.matmul %1, %2, %cst {dimension_numbers = #tpu.dot_dimension_numbers<[1], [0], [0], [1], [0, 0, 1, 1], [], []>} : vector<16x32xbf16>, vector<32x64xbf16>, vector<16x64xf32> -> vector<16x64xf32>
    %4 = vector.shape_cast %3 : vector<16x64xf32> to vector<1x16x64xf32>
    %5 = vector.extract_strided_slice %0 {offsets = [0, 0, 0], sizes = [1, 8, 32], strides = [1, 1, 1]} : vector<1x16x32xbf16> to vector<1x8x32xbf16>
    %6 = vector.shape_cast %5 : vector<1x8x32xbf16> to vector<8x32xbf16>
    %c0_4 = arith.constant 0 : index
    %c0_5 = arith.constant 0 : index
    %7 = vector.load %arg2[%c0_4, %c0_5] : memref<32x32xbf16, #tpu.memory_space<vmem>>, vector<32x32xbf16>
    %cst_6 = arith.constant dense<0.000000e+00> : vector<8x32xf32>
    %8 = tpu.matmul %6, %7, %cst_6 {dimension_numbers = #tpu.dot_dimension_numbers<[1], [0], [0], [1], [0, 0, 1, 1], [], []>} : vector<8x32xbf16>, vector<32x32xbf16>, vector<8x32xf32> -> vector<8x32xf32>
    %9 = vector.shape_cast %8 : vector<8x32xf32> to vector<1x8x32xf32>
    %10 = vector.extract_strided_slice %9 {offsets = [0, 0, 0], sizes = [1, 3, 32], strides = [1, 1, 1]} : vector<1x8x32xf32> to vector<1x3x32xf32>
    %11 = tpu.iota {dimensions = array<i32: 2>} : vector<1x3x16xi32>
    %c3_i32 = arith.constant 3 : i32
    %12 = vector.broadcast %c3_i32 : i32 to vector<1x3x16xi32>
    %13 = arith.cmpi slt, %11, %12 : vector<1x3x16xi32>
    %14 = vector.extract_strided_slice %10 {offsets = [0, 0, 0], sizes = [1, 3, 4], strides = [1, 1, 1]} : vector<1x3x32xf32> to vector<1x3x4xf32>
    %15 = vector.extract_strided_slice %4 {offsets = [0, 0, 0], sizes = [1, 16, 4], strides = [1, 1, 1]} : vector<1x16x64xf32> to vector<1x16x4xf32>
    %16 = vector.extract_strided_slice %4 {offsets = [0, 0, 32], sizes = [1, 16, 4], strides = [1, 1, 1]} : vector<1x16x64xf32> to vector<1x16x4xf32>
    "tpu.trace_start"() <{level = 10 : i32, message = "bqd,bkd->bqk"}> : () -> ()
    %cst_7 = arith.constant dense<0.000000e+00> : vector<1x3x16xf32>
    %17 = tpu.matmul %14, %15, %cst_7 {dimension_numbers = #tpu.dot_dimension_numbers<[2], [2], [1], [1], [0, 0, 0, 1, 1, 1], [0], [0]>} : vector<1x3x4xf32>, vector<1x16x4xf32>, vector<1x3x16xf32> -> vector<1x3x16xf32>
    %cst_8 = arith.constant -1.000000e+30 : f32
    "tpu.trace_stop"() : () -> ()
    %18 = vector.broadcast %cst_8 : f32 to vector<1x3x16xf32>
    %19 = arith.select %13, %18, %17 : vector<1x3x16xi1>, vector<1x3x16xf32>
    %cst_9 = arith.constant dense<0xFF800000> : vector<1x3xf32>
    %20 = vector.multi_reduction <maximumf>, %19, %cst_9 [2] : vector<1x3x16xf32> to vector<1x3xf32>
    %21 = vector.shape_cast %20 : vector<1x3xf32> to vector<1x3x1xf32>
    %22 = vector.broadcast %21 : vector<1x3x1xf32> to vector<1x3x16xf32>
    %23 = arith.subf %19, %22 : vector<1x3x16xf32>
    %24 = math.exp %23 : vector<1x3x16xf32>
    %cst_10 = arith.constant dense<0.000000e+00> : vector<1x3xf32>
    %25 = vector.multi_reduction <add>, %24, %cst_10 [2] : vector<1x3x16xf32> to vector<1x3xf32>
    %26 = vector.shape_cast %25 : vector<1x3xf32> to vector<1x3x1xf32>
    %27 = tpu.reciprocal %26 {approx = true} : vector<1x3x1xf32> -> vector<1x3x1xf32>
    %28 = vector.broadcast %27 : vector<1x3x1xf32> to vector<1x3x16xf32>
    %29 = arith.mulf %24, %28 : vector<1x3x16xf32>
    "tpu.trace_start"() <{level = 10 : i32, message = "bqk,bkd->bqd"}> : () -> ()
    %cst_11 = arith.constant dense<0.000000e+00> : vector<1x3x4xf32>
    %30 = tpu.matmul %29, %16, %cst_11 {dimension_numbers = #tpu.dot_dimension_numbers<[2], [1], [1], [2], [0, 0, 0, 1, 1, 2], [0], [0]>} : vector<1x3x16xf32>, vector<1x16x4xf32>, vector<1x3x4xf32> -> vector<1x3x4xf32>
    "tpu.trace_stop"() : () -> ()
    %31 = vector.extract_strided_slice %10 {offsets = [0, 0, 4], sizes = [1, 3, 4], strides = [1, 1, 1]} : vector<1x3x32xf32> to vector<1x3x4xf32>
    %32 = vector.extract_strided_slice %4 {offsets = [0, 0, 4], sizes = [1, 16, 4], strides = [1, 1, 1]} : vector<1x16x64xf32> to vector<1x16x4xf32>
    %33 = vector.extract_strided_slice %4 {offsets = [0, 0, 36], sizes = [1, 16, 4], strides = [1, 1, 1]} : vector<1x16x64xf32> to vector<1x16x4xf32>
    "tpu.trace_start"() <{level = 10 : i32, message = "bqd,bkd->bqk"}> : () -> ()
    %cst_12 = arith.constant dense<0.000000e+00> : vector<1x3x16xf32>
    %34 = tpu.matmul %31, %32, %cst_12 {dimension_numbers = #tpu.dot_dimension_numbers<[2], [2], [1], [1], [0, 0, 0, 1, 1, 1], [0], [0]>} : vector<1x3x4xf32>, vector<1x16x4xf32>, vector<1x3x16xf32> -> vector<1x3x16xf32>
    %cst_13 = arith.constant -1.000000e+30 : f32
    "tpu.trace_stop"() : () -> ()
    %35 = vector.broadcast %cst_13 : f32 to vector<1x3x16xf32>
    %36 = arith.select %13, %35, %34 : vector<1x3x16xi1>, vector<1x3x16xf32>
    %cst_14 = arith.constant dense<0xFF800000> : vector<1x3xf32>
    %37 = vector.multi_reduction <maximumf>, %36, %cst_14 [2] : vector<1x3x16xf32> to vector<1x3xf32>
    %38 = vector.shape_cast %37 : vector<1x3xf32> to vector<1x3x1xf32>
    %39 = vector.broadcast %38 : vector<1x3x1xf32> to vector<1x3x16xf32>
    %40 = arith.subf %36, %39 : vector<1x3x16xf32>
    %41 = math.exp %40 : vector<1x3x16xf32>
    %cst_15 = arith.constant dense<0.000000e+00> : vector<1x3xf32>
    %42 = vector.multi_reduction <add>, %41, %cst_15 [2] : vector<1x3x16xf32> to vector<1x3xf32>
    %43 = vector.shape_cast %42 : vector<1x3xf32> to vector<1x3x1xf32>
    %44 = tpu.reciprocal %43 {approx = true} : vector<1x3x1xf32> -> vector<1x3x1xf32>
    %45 = vector.broadcast %44 : vector<1x3x1xf32> to vector<1x3x16xf32>
    %46 = arith.mulf %41, %45 : vector<1x3x16xf32>
    "tpu.trace_start"() <{level = 10 : i32, message = "bqk,bkd->bqd"}> : () -> ()
    %cst_16 = arith.constant dense<0.000000e+00> : vector<1x3x4xf32>
    %47 = tpu.matmul %46, %33, %cst_16 {dimension_numbers = #tpu.dot_dimension_numbers<[2], [1], [1], [2], [0, 0, 0, 1, 1, 2], [0], [0]>} : vector<1x3x16xf32>, vector<1x16x4xf32>, vector<1x3x4xf32> -> vector<1x3x4xf32>
    "tpu.trace_stop"() : () -> ()
    %48 = vector.extract_strided_slice %10 {offsets = [0, 0, 8], sizes = [1, 3, 4], strides = [1, 1, 1]} : vector<1x3x32xf32> to vector<1x3x4xf32>
    %49 = vector.extract_strided_slice %4 {offsets = [0, 0, 8], sizes = [1, 16, 4], strides = [1, 1, 1]} : vector<1x16x64xf32> to vector<1x16x4xf32>
    %50 = vector.extract_strided_slice %4 {offsets = [0, 0, 40], sizes = [1, 16, 4], strides = [1, 1, 1]} : vector<1x16x64xf32> to vector<1x16x4xf32>
    "tpu.trace_start"() <{level = 10 : i32, message = "bqd,bkd->bqk"}> : () -> ()
    %cst_17 = arith.constant dense<0.000000e+00> : vector<1x3x16xf32>
    %51 = tpu.matmul %48, %49, %cst_17 {dimension_numbers = #tpu.dot_dimension_numbers<[2], [2], [1], [1], [0, 0, 0, 1, 1, 1], [0], [0]>} : vector<1x3x4xf32>, vector<1x16x4xf32>, vector<1x3x16xf32> -> vector<1x3x16xf32>
    %cst_18 = arith.constant -1.000000e+30 : f32
    "tpu.trace_stop"() : () -> ()
    %52 = vector.broadcast %cst_18 : f32 to vector<1x3x16xf32>
    %53 = arith.select %13, %52, %51 : vector<1x3x16xi1>, vector<1x3x16xf32>
    %cst_19 = arith.constant dense<0xFF800000> : vector<1x3xf32>
    %54 = vector.multi_reduction <maximumf>, %53, %cst_19 [2] : vector<1x3x16xf32> to vector<1x3xf32>
    %55 = vector.shape_cast %54 : vector<1x3xf32> to vector<1x3x1xf32>
    %56 = vector.broadcast %55 : vector<1x3x1xf32> to vector<1x3x16xf32>
    %57 = arith.subf %53, %56 : vector<1x3x16xf32>
    %58 = math.exp %57 : vector<1x3x16xf32>
    %cst_20 = arith.constant dense<0.000000e+00> : vector<1x3xf32>
    %59 = vector.multi_reduction <add>, %58, %cst_20 [2] : vector<1x3x16xf32> to vector<1x3xf32>
    %60 = vector.shape_cast %59 : vector<1x3xf32> to vector<1x3x1xf32>
    %61 = tpu.reciprocal %60 {approx = true} : vector<1x3x1xf32> -> vector<1x3x1xf32>
    %62 = vector.broadcast %61 : vector<1x3x1xf32> to vector<1x3x16xf32>
    %63 = arith.mulf %58, %62 : vector<1x3x16xf32>
    "tpu.trace_start"() <{level = 10 : i32, message = "bqk,bkd->bqd"}> : () -> ()
    %cst_21 = arith.constant dense<0.000000e+00> : vector<1x3x4xf32>
    %64 = tpu.matmul %63, %50, %cst_21 {dimension_numbers = #tpu.dot_dimension_numbers<[2], [1], [1], [2], [0, 0, 0, 1, 1, 2], [0], [0]>} : vector<1x3x16xf32>, vector<1x16x4xf32>, vector<1x3x4xf32> -> vector<1x3x4xf32>
    "tpu.trace_stop"() : () -> ()
    %65 = vector.extract_strided_slice %10 {offsets = [0, 0, 12], sizes = [1, 3, 4], strides = [1, 1, 1]} : vector<1x3x32xf32> to vector<1x3x4xf32>
    %66 = vector.extract_strided_slice %4 {offsets = [0, 0, 12], sizes = [1, 16, 4], strides = [1, 1, 1]} : vector<1x16x64xf32> to vector<1x16x4xf32>
    %67 = vector.extract_strided_slice %4 {offsets = [0, 0, 44], sizes = [1, 16, 4], strides = [1, 1, 1]} : vector<1x16x64xf32> to vector<1x16x4xf32>
    "tpu.trace_start"() <{level = 10 : i32, message = "bqd,bkd->bqk"}> : () -> ()
    %cst_22 = arith.constant dense<0.000000e+00> : vector<1x3x16xf32>
    %68 = tpu.matmul %65, %66, %cst_22 {dimension_numbers = #tpu.dot_dimension_numbers<[2], [2], [1], [1], [0, 0, 0, 1, 1, 1], [0], [0]>} : vector<1x3x4xf32>, vector<1x16x4xf32>, vector<1x3x16xf32> -> vector<1x3x16xf32>
    %cst_23 = arith.constant -1.000000e+30 : f32
    "tpu.trace_stop"() : () -> ()
    %69 = vector.broadcast %cst_23 : f32 to vector<1x3x16xf32>
    %70 = arith.select %13, %69, %68 : vector<1x3x16xi1>, vector<1x3x16xf32>
    %cst_24 = arith.constant dense<0xFF800000> : vector<1x3xf32>
    %71 = vector.multi_reduction <maximumf>, %70, %cst_24 [2] : vector<1x3x16xf32> to vector<1x3xf32>
    %72 = vector.shape_cast %71 : vector<1x3xf32> to vector<1x3x1xf32>
    %73 = vector.broadcast %72 : vector<1x3x1xf32> to vector<1x3x16xf32>
    %74 = arith.subf %70, %73 : vector<1x3x16xf32>
    %75 = math.exp %74 : vector<1x3x16xf32>
    %cst_25 = arith.constant dense<0.000000e+00> : vector<1x3xf32>
    %76 = vector.multi_reduction <add>, %75, %cst_25 [2] : vector<1x3x16xf32> to vector<1x3xf32>
    %77 = vector.shape_cast %76 : vector<1x3xf32> to vector<1x3x1xf32>
    %78 = tpu.reciprocal %77 {approx = true} : vector<1x3x1xf32> -> vector<1x3x1xf32>
    %79 = vector.broadcast %78 : vector<1x3x1xf32> to vector<1x3x16xf32>
    %80 = arith.mulf %75, %79 : vector<1x3x16xf32>
    "tpu.trace_start"() <{level = 10 : i32, message = "bqk,bkd->bqd"}> : () -> ()
    %cst_26 = arith.constant dense<0.000000e+00> : vector<1x3x4xf32>
    %81 = tpu.matmul %80, %67, %cst_26 {dimension_numbers = #tpu.dot_dimension_numbers<[2], [1], [1], [2], [0, 0, 0, 1, 1, 2], [0], [0]>} : vector<1x3x16xf32>, vector<1x16x4xf32>, vector<1x3x4xf32> -> vector<1x3x4xf32>
    "tpu.trace_stop"() : () -> ()
    %82 = vector.extract_strided_slice %10 {offsets = [0, 0, 16], sizes = [1, 3, 4], strides = [1, 1, 1]} : vector<1x3x32xf32> to vector<1x3x4xf32>
    %83 = vector.extract_strided_slice %4 {offsets = [0, 0, 16], sizes = [1, 16, 4], strides = [1, 1, 1]} : vector<1x16x64xf32> to vector<1x16x4xf32>
    %84 = vector.extract_strided_slice %4 {offsets = [0, 0, 48], sizes = [1, 16, 4], strides = [1, 1, 1]} : vector<1x16x64xf32> to vector<1x16x4xf32>
    "tpu.trace_start"() <{level = 10 : i32, message = "bqd,bkd->bqk"}> : () -> ()
    %cst_27 = arith.constant dense<0.000000e+00> : vector<1x3x16xf32>
    %85 = tpu.matmul %82, %83, %cst_27 {dimension_numbers = #tpu.dot_dimension_numbers<[2], [2], [1], [1], [0, 0, 0, 1, 1, 1], [0], [0]>} : vector<1x3x4xf32>, vector<1x16x4xf32>, vector<1x3x16xf32> -> vector<1x3x16xf32>
    %cst_28 = arith.constant -1.000000e+30 : f32
    "tpu.trace_stop"() : () -> ()
    %86 = vector.broadcast %cst_28 : f32 to vector<1x3x16xf32>
    %87 = arith.select %13, %86, %85 : vector<1x3x16xi1>, vector<1x3x16xf32>
    %cst_29 = arith.constant dense<0xFF800000> : vector<1x3xf32>
    %88 = vector.multi_reduction <maximumf>, %87, %cst_29 [2] : vector<1x3x16xf32> to vector<1x3xf32>
    %89 = vector.shape_cast %88 : vector<1x3xf32> to vector<1x3x1xf32>
    %90 = vector.broadcast %89 : vector<1x3x1xf32> to vector<1x3x16xf32>
    %91 = arith.subf %87, %90 : vector<1x3x16xf32>
    %92 = math.exp %91 : vector<1x3x16xf32>
    %cst_30 = arith.constant dense<0.000000e+00> : vector<1x3xf32>
    %93 = vector.multi_reduction <add>, %92, %cst_30 [2] : vector<1x3x16xf32> to vector<1x3xf32>
    %94 = vector.shape_cast %93 : vector<1x3xf32> to vector<1x3x1xf32>
    %95 = tpu.reciprocal %94 {approx = true} : vector<1x3x1xf32> -> vector<1x3x1xf32>
    %96 = vector.broadcast %95 : vector<1x3x1xf32> to vector<1x3x16xf32>
    %97 = arith.mulf %92, %96 : vector<1x3x16xf32>
    "tpu.trace_start"() <{level = 10 : i32, message = "bqk,bkd->bqd"}> : () -> ()
    %cst_31 = arith.constant dense<0.000000e+00> : vector<1x3x4xf32>
    %98 = tpu.matmul %97, %84, %cst_31 {dimension_numbers = #tpu.dot_dimension_numbers<[2], [1], [1], [2], [0, 0, 0, 1, 1, 2], [0], [0]>} : vector<1x3x16xf32>, vector<1x16x4xf32>, vector<1x3x4xf32> -> vector<1x3x4xf32>
    "tpu.trace_stop"() : () -> ()
    %99 = vector.extract_strided_slice %10 {offsets = [0, 0, 20], sizes = [1, 3, 4], strides = [1, 1, 1]} : vector<1x3x32xf32> to vector<1x3x4xf32>
    %100 = vector.extract_strided_slice %4 {offsets = [0, 0, 20], sizes = [1, 16, 4], strides = [1, 1, 1]} : vector<1x16x64xf32> to vector<1x16x4xf32>
    %101 = vector.extract_strided_slice %4 {offsets = [0, 0, 52], sizes = [1, 16, 4], strides = [1, 1, 1]} : vector<1x16x64xf32> to vector<1x16x4xf32>
    "tpu.trace_start"() <{level = 10 : i32, message = "bqd,bkd->bqk"}> : () -> ()
    %cst_32 = arith.constant dense<0.000000e+00> : vector<1x3x16xf32>
    %102 = tpu.matmul %99, %100, %cst_32 {dimension_numbers = #tpu.dot_dimension_numbers<[2], [2], [1], [1], [0, 0, 0, 1, 1, 1], [0], [0]>} : vector<1x3x4xf32>, vector<1x16x4xf32>, vector<1x3x16xf32> -> vector<1x3x16xf32>
    %cst_33 = arith.constant -1.000000e+30 : f32
    "tpu.trace_stop"() : () -> ()
    %103 = vector.broadcast %cst_33 : f32 to vector<1x3x16xf32>
    %104 = arith.select %13, %103, %102 : vector<1x3x16xi1>, vector<1x3x16xf32>
    %cst_34 = arith.constant dense<0xFF800000> : vector<1x3xf32>
    %105 = vector.multi_reduction <maximumf>, %104, %cst_34 [2] : vector<1x3x16xf32> to vector<1x3xf32>
    %106 = vector.shape_cast %105 : vector<1x3xf32> to vector<1x3x1xf32>
    %107 = vector.broadcast %106 : vector<1x3x1xf32> to vector<1x3x16xf32>
    %108 = arith.subf %104, %107 : vector<1x3x16xf32>
    %109 = math.exp %108 : vector<1x3x16xf32>
    %cst_35 = arith.constant dense<0.000000e+00> : vector<1x3xf32>
    %110 = vector.multi_reduction <add>, %109, %cst_35 [2] : vector<1x3x16xf32> to vector<1x3xf32>
    %111 = vector.shape_cast %110 : vector<1x3xf32> to vector<1x3x1xf32>
    %112 = tpu.reciprocal %111 {approx = true} : vector<1x3x1xf32> -> vector<1x3x1xf32>
    %113 = vector.broadcast %112 : vector<1x3x1xf32> to vector<1x3x16xf32>
    %114 = arith.mulf %109, %113 : vector<1x3x16xf32>
    "tpu.trace_start"() <{level = 10 : i32, message = "bqk,bkd->bqd"}> : () -> ()
    %cst_36 = arith.constant dense<0.000000e+00> : vector<1x3x4xf32>
    %115 = tpu.matmul %114, %101, %cst_36 {dimension_numbers = #tpu.dot_dimension_numbers<[2], [1], [1], [2], [0, 0, 0, 1, 1, 2], [0], [0]>} : vector<1x3x16xf32>, vector<1x16x4xf32>, vector<1x3x4xf32> -> vector<1x3x4xf32>
    "tpu.trace_stop"() : () -> ()
    %116 = vector.extract_strided_slice %10 {offsets = [0, 0, 24], sizes = [1, 3, 4], strides = [1, 1, 1]} : vector<1x3x32xf32> to vector<1x3x4xf32>
    %117 = vector.extract_strided_slice %4 {offsets = [0, 0, 24], sizes = [1, 16, 4], strides = [1, 1, 1]} : vector<1x16x64xf32> to vector<1x16x4xf32>
    %118 = vector.extract_strided_slice %4 {offsets = [0, 0, 56], sizes = [1, 16, 4], strides = [1, 1, 1]} : vector<1x16x64xf32> to vector<1x16x4xf32>
    "tpu.trace_start"() <{level = 10 : i32, message = "bqd,bkd->bqk"}> : () -> ()
    %cst_37 = arith.constant dense<0.000000e+00> : vector<1x3x16xf32>
    %119 = tpu.matmul %116, %117, %cst_37 {dimension_numbers = #tpu.dot_dimension_numbers<[2], [2], [1], [1], [0, 0, 0, 1, 1, 1], [0], [0]>} : vector<1x3x4xf32>, vector<1x16x4xf32>, vector<1x3x16xf32> -> vector<1x3x16xf32>
    %cst_38 = arith.constant -1.000000e+30 : f32
    "tpu.trace_stop"() : () -> ()
    %120 = vector.broadcast %cst_38 : f32 to vector<1x3x16xf32>
    %121 = arith.select %13, %120, %119 : vector<1x3x16xi1>, vector<1x3x16xf32>
    %cst_39 = arith.constant dense<0xFF800000> : vector<1x3xf32>
    %122 = vector.multi_reduction <maximumf>, %121, %cst_39 [2] : vector<1x3x16xf32> to vector<1x3xf32>
    %123 = vector.shape_cast %122 : vector<1x3xf32> to vector<1x3x1xf32>
    %124 = vector.broadcast %123 : vector<1x3x1xf32> to vector<1x3x16xf32>
    %125 = arith.subf %121, %124 : vector<1x3x16xf32>
    %126 = math.exp %125 : vector<1x3x16xf32>
    %cst_40 = arith.constant dense<0.000000e+00> : vector<1x3xf32>
    %127 = vector.multi_reduction <add>, %126, %cst_40 [2] : vector<1x3x16xf32> to vector<1x3xf32>
    %128 = vector.shape_cast %127 : vector<1x3xf32> to vector<1x3x1xf32>
    %129 = tpu.reciprocal %128 {approx = true} : vector<1x3x1xf32> -> vector<1x3x1xf32>
    %130 = vector.broadcast %129 : vector<1x3x1xf32> to vector<1x3x16xf32>
    %131 = arith.mulf %126, %130 : vector<1x3x16xf32>
    "tpu.trace_start"() <{level = 10 : i32, message = "bqk,bkd->bqd"}> : () -> ()
    %cst_41 = arith.constant dense<0.000000e+00> : vector<1x3x4xf32>
    %132 = tpu.matmul %131, %118, %cst_41 {dimension_numbers = #tpu.dot_dimension_numbers<[2], [1], [1], [2], [0, 0, 0, 1, 1, 2], [0], [0]>} : vector<1x3x16xf32>, vector<1x16x4xf32>, vector<1x3x4xf32> -> vector<1x3x4xf32>
    "tpu.trace_stop"() : () -> ()
    %133 = vector.extract_strided_slice %10 {offsets = [0, 0, 28], sizes = [1, 3, 4], strides = [1, 1, 1]} : vector<1x3x32xf32> to vector<1x3x4xf32>
    %134 = vector.extract_strided_slice %4 {offsets = [0, 0, 28], sizes = [1, 16, 4], strides = [1, 1, 1]} : vector<1x16x64xf32> to vector<1x16x4xf32>
    %135 = vector.extract_strided_slice %4 {offsets = [0, 0, 60], sizes = [1, 16, 4], strides = [1, 1, 1]} : vector<1x16x64xf32> to vector<1x16x4xf32>
    "tpu.trace_start"() <{level = 10 : i32, message = "bqd,bkd->bqk"}> : () -> ()
    %cst_42 = arith.constant dense<0.000000e+00> : vector<1x3x16xf32>
    %136 = tpu.matmul %133, %134, %cst_42 {dimension_numbers = #tpu.dot_dimension_numbers<[2], [2], [1], [1], [0, 0, 0, 1, 1, 1], [0], [0]>} : vector<1x3x4xf32>, vector<1x16x4xf32>, vector<1x3x16xf32> -> vector<1x3x16xf32>
    %cst_43 = arith.constant -1.000000e+30 : f32
    "tpu.trace_stop"() : () -> ()
    %137 = vector.broadcast %cst_43 : f32 to vector<1x3x16xf32>
    %138 = arith.select %13, %137, %136 : vector<1x3x16xi1>, vector<1x3x16xf32>
    %cst_44 = arith.constant dense<0xFF800000> : vector<1x3xf32>
    %139 = vector.multi_reduction <maximumf>, %138, %cst_44 [2] : vector<1x3x16xf32> to vector<1x3xf32>
    %140 = vector.shape_cast %139 : vector<1x3xf32> to vector<1x3x1xf32>
    %141 = vector.broadcast %140 : vector<1x3x1xf32> to vector<1x3x16xf32>
    %142 = arith.subf %138, %141 : vector<1x3x16xf32>
    %143 = math.exp %142 : vector<1x3x16xf32>
    %cst_45 = arith.constant dense<0.000000e+00> : vector<1x3xf32>
    %144 = vector.multi_reduction <add>, %143, %cst_45 [2] : vector<1x3x16xf32> to vector<1x3xf32>
    %145 = vector.shape_cast %144 : vector<1x3xf32> to vector<1x3x1xf32>
    %146 = tpu.reciprocal %145 {approx = true} : vector<1x3x1xf32> -> vector<1x3x1xf32>
    %147 = vector.broadcast %146 : vector<1x3x1xf32> to vector<1x3x16xf32>
    %148 = arith.mulf %143, %147 : vector<1x3x16xf32>
    "tpu.trace_start"() <{level = 10 : i32, message = "bqk,bkd->bqd"}> : () -> ()
    %cst_46 = arith.constant dense<0.000000e+00> : vector<1x3x4xf32>
    %149 = tpu.matmul %148, %135, %cst_46 {dimension_numbers = #tpu.dot_dimension_numbers<[2], [1], [1], [2], [0, 0, 0, 1, 1, 2], [0], [0]>} : vector<1x3x16xf32>, vector<1x16x4xf32>, vector<1x3x4xf32> -> vector<1x3x4xf32>
    "tpu.trace_stop"() : () -> ()
    %150 = tpu.concatenate %30, %47, %64, %81, %98, %115, %132, %149 in 2 : vector<1x3x4xf32>, vector<1x3x4xf32>, vector<1x3x4xf32>, vector<1x3x4xf32>, vector<1x3x4xf32>, vector<1x3x4xf32>, vector<1x3x4xf32>, vector<1x3x4xf32> -> vector<1x3x32xf32>
    %c0_47 = arith.constant 0 : index
    %c0_48 = arith.constant 0 : index
    %c0_49 = arith.constant 0 : index
    %151 = vector.load %arg4[%c0_47, %c0_48, %c0_49] : memref<1x3x32xf32, #tpu.memory_space<vmem>>, vector<1x3x32xf32>
    tpu.vector_store %arg4[%c0_47, %c0_48, %c0_49], %150 {strides = array<i32>} : memref<1x3x32xf32, #tpu.memory_space<vmem>>, vector<1x3x32xf32>,
    return
  }
  func.func @transform_0(%arg0: i32) -> (i32, i32, i32) {
    %c0_i32 = arith.constant 0 : i32
    %c0_i32_0 = arith.constant 0 : i32
    %c0_i32_1 = arith.constant 0 : i32
    return %arg0, %c0_i32, %c0_i32_0 : i32, i32, i32
  }
  func.func @transform_1(%arg0: i32) -> (i32, i32) {
    %c0_i32 = arith.constant 0 : i32
    %c0_i32_0 = arith.constant 0 : i32
    %c0_i32_1 = arith.constant 0 : i32
    return %c0_i32, %c0_i32_0 : i32, i32
  }
  func.func @transform_2(%arg0: i32) -> (i32, i32) {
    %c0_i32 = arith.constant 0 : i32
    %c0_i32_0 = arith.constant 0 : i32
    %c0_i32_1 = arith.constant 0 : i32
    return %c0_i32, %c0_i32_0 : i32, i32
  }
  func.func @transform_3(%arg0: i32) -> (i32, i32, i32) {
    %c0_i32 = arith.constant 0 : i32
    %c0_i32_0 = arith.constant 0 : i32
    %c0_i32_1 = arith.constant 0 : i32
    return %arg0, %c0_i32, %c0_i32_0 : i32, i32, i32
  }
}

</mosaic_0001>

<bundles_post_ra>
// kernel: tpu_custom_call.1
= control target key start
LH: loop header
LB: loop body
LE: loop exit
PB: predicated region body
PF: predicated region fallthrough
CT: control target
= control target key end

     0   :  { %8 = vsyncpa [#allocation3], 0  ;;  %s2888_s0 = inlined_call_operand.hbm [shape: bf16[2,16,32], index: 0, kind: input, shape index: {}]   ;;  %s2889_s1 = inlined_call_operand.hbm [shape: bf16[32,32], index: 1, kind: input, shape index: {}]   ;;  %s2890_s2 = inlined_call_operand.hbm [shape: bf16[32,64], index: 2, kind: input, shape index: {}]   ;;  %s2891_s3 = inlined_call_operand.vmem [shape: f32[2,3,32], index: 3, kind: output, shape index: {}]  }
   0x1   :  { %10 = vsyncpa [#allocation3 + $0x1], 0 }
   0x2   :  { %11 = vsyncpa [#allocation5], 0  ;;  %s2527_s12 = smov 0   ;;  %s2529_s13 = smov 0  }
   0x3   :  { %s2531_s14 = smov 0   ;;  %s2533_s15 = smov 0  }
   0x4 LB: > { %s2546_s16 = sadd.s32 4294967295, %s2475_s15   ;;  %p37_p0 = scmp.ne.s32.totalorder %s2467_s13, %s2463_s12  ;;  %s2475_s15 = sphi %s2533_s15, %s2908_s15   ;;  %s2471_s14 = sphi %s2531_s14, %s2907_s14   ;;  %s2467_s13 = sphi %s2529_s13, %s2906_s13   ;;  %s2463_s12 = sphi %s2527_s12, %s2905_s12  }
   0x5   : > { %p2892_p1 = scmp.eq.s32.totalorder %s2546_s16, 0  ;;  %p1860_p2 = scmp.ge.s32.totalorder %s2475_s15, 1 }
   0x6   : > { %p116_p3 = scmp.lt.s32.totalorder %s2475_s15, 3  ;;  %s2477_s19 = smov [#allocation4]  }
   0x7   : > { %p2554_p4 = por %p2892_p1, %p37_p0  ;;  %s128_s20 = sshll.u32 %s2477_s19, 4  ;;  %s129_s20 = int_to_ptr.vmem [resolvable:$true] %s128_s20 }
   0x8   : > { %p2558_p5 = pnand %p1860_p2, %p116_p3  ;;  %s2478_s22 = smov [#allocation6]  }
   0x9   : > { %s2895_s17 = scalar_select %p2554_p4, 1, 0 }
   0xa   : > { %s2896_s18 = scalar_select %p2558_p5, 1, 0 }
   0xb   : > { %p2162_p6 = pneg %p2558_p5  ;;  %s141_s23 = sshll.u32 %s2478_s22, 4  ;;  %s2570_s23 = int_to_ptr.vmem [resolvable:$true] %s141_s23 }
   0xc   : > { %s2351_s26 = scalar_lea.hbm %s2889_s1, 256 }
   0xd   : > { %p2566_p7 = pnand %p2162_p6, %p2892_p1  ;;  %p2352_p8 = scmp.ne.s32.totalorder %s2889_s1, %s2351_s26 }
   0xe   : > { %p2358_p12 = scmp.lt.u32.totalorder %s2351_s26, %s2889_s1 }
   0xf   : > { %p2353_p9 = pneg %p2566_p7 }
  0x11   : > { %p2354_p10 = pnand %p2353_p9, %p2352_p8 }
  0x13   : > { %p2355_p11 = pneg %p2354_p10 }
  0x15   : > { %p2360_p13 = pnand %p2358_p12, %p2355_p11 }
  0x17   : > { %2363 = shalt.err (!%p2360_p13)
}
  0x18   : > { %s2364_s4 = scalar_lea.vmem %s129_s20, 256  ;;  %p2372_p6 = scmp.lt.s32.totalorder %s129_s20, %s129_s20 }
  0x19   : > { %p2365_p0 = scmp.ne.s32.totalorder %s129_s20, %s2364_s4  ;;  %p2373_p1 = scmp.lt.s32.totalorder %s2364_s4, %s2364_s4 }
  0x1b   : > { %p2367_p2 = pnand %p2365_p0, %p2353_p9  ;;  %p2374_p4 = por %p2373_p1, %p2372_p6 }
  0x1d   : > { %p2368_p3 = pneg %p2367_p2 }
  0x1f   : > { %p2375_p5 = pnand %p2374_p4, %p2368_p3 }
  0x21   : > { %2378 = shalt.err (!%p2375_p5)
}
  0x22   : > { %s2479_s5 = smov 64   ;;  %s2480_s6 = smov 4  }
  0x23   : > { %2165 = dma.hbm_to_vmem [thread:$0]  (!%p2566_p7), %s2889_s1, 256, %s129_s20, [#allocation5], %s2479_s5, %s2479_s5, %s2480_s6  }
  0x24   : > { %s2379_s11 = scalar_lea.hbm %s2890_s2, 256 }
  0x25   : > { %p2380_p1 = scmp.ne.s32.totalorder %s2890_s2, %s2379_s11  ;;  %p2386_p8 = scmp.lt.u32.totalorder %s2379_s11, %s2890_s2 }
  0x27   : > { %p2382_p4 = pnand %p2380_p1, %p2353_p9 }
  0x29   : > { %p2383_p5 = pneg %p2382_p4 }
  0x2b   : > { %p2388_p10 = pnand %p2386_p8, %p2383_p5 }
  0x2d   : > { %2391 = shalt.err (!%p2388_p10)
}
  0x2e   : > { %s2392_s20 = scalar_lea.vmem %s2570_s23, 256  ;;  %p2400_p0 = scmp.lt.s32.totalorder %s2570_s23, %s2570_s23 }
  0x2f   : > { %p2393_p11 = scmp.ne.s32.totalorder %s2570_s23, %s2392_s20  ;;  %p2401_p2 = scmp.lt.s32.totalorder %s2392_s20, %s2392_s20 }
  0x31   : > { %p2395_p12 = pnand %p2393_p11, %p2353_p9  ;;  %p2402_p3 = por %p2401_p2, %p2400_p0 }
  0x33   : > { %p2396_p13 = pneg %p2395_p12 }
  0x35   : > { %p2403_p6 = pnand %p2402_p3, %p2396_p13 }
  0x37   : > { %2406 = shalt.err (!%p2403_p6)
}
  0x38   : > { %2168 = dma.hbm_to_vmem [thread:$0]  (!%p2566_p7), %s2890_s2, 256, %s2570_s23, [#allocation5], %s2479_s5, %s2479_s5, %s2480_s6  }
  0x39   : > { %s2626_s27 = sadd.s32 1, %s2475_s15   ;;  %s24_s21 = sadd.s32 1, %s2471_s14 }
  0x3a   : > { %s21_s28 = ssub.s32 %s2475_s15, %s2626_s27  ;;  %p31_p9 = scmp.ne.s32.totalorder %s2471_s14, %s2467_s13 }
  0x3b   : > { %p22_p1 = scmp.eq.s32.totalorder %s21_s28, 0  ;;  %p32_p4 = scmp.eq.s32.totalorder %s2475_s15, 0 }
  0x3c   : > { %p2175_p5 = scmp.lt.s32.totalorder %s2475_s15, 2  ;;  %s155_s29 = sand.u32 1, %s2471_s14  }
  0x3d   : > { %s2637_s30 = scalar_select %p22_p1, %s2471_s14, %s24_s21  }
  0x3e   : > { %p33_p8 = por %p32_p4, %p31_p9  ;;  %s1864_s4 = sshll.u32 %s155_s29, 3 }
  0x3f   : > { %s1913_s7 = sshll.u32 %s2475_s15, 7  ;;  %s159_s23 = scalar_lea.vmem [#allocation2], %s1864_s4 }
  0x40   : > { %s2643_s10 = scalar_lea.hbm %s2888_s0, %s1913_s7  ;;  %s166_s11 = sshll.u32 %s159_s23, 4  ;;  %s2649_s11 = int_to_ptr.vmem [resolvable:$true] %s166_s11 }
  0x41   : > { %p2645_p7 = pnand %p2175_p5, %p33_p8  ;;  %s2651_s15 = scalar_lea.sflag [#allocation3], %s155_s29 }
  0x42   : > { %s2407_s19 = scalar_lea.hbm %s2643_s10, 128  ;;  %s2412_s20 = scalar_lea.hbm %s2888_s0, 256 }
  0x43   : > { %p2408_p10 = scmp.ne.s32.totalorder %s2643_s10, %s2407_s19  ;;  %p2409_p11 = pneg %p2645_p7 }
  0x44   : > { %p2413_p0 = scmp.lt.u32.totalorder %s2643_s10, %s2888_s0  ;;  %p2414_p2 = scmp.lt.u32.totalorder %s2412_s20, %s2407_s19 }
  0x45   : > { %p2410_p12 = pnand %p2409_p11, %p2408_p10  ;;  %p2416_p6 = scmp.lt.u32.totalorder %s2407_s19, %s2643_s10 }
  0x46   : > { %p2415_p3 = por %p2414_p2, %p2413_p0 }
  0x47   : > { %p2411_p13 = pneg %p2410_p12 }
  0x48   : > { %p2417_p9 = por %p2416_p6, %p2415_p3 }
  0x4a   : > { %p2418_p1 = pnand %p2417_p9, %p2411_p13 }
  0x4c   : > { %2421 = shalt.err (!%p2418_p1)
}
  0x4d   : > { %s2422_s21 = scalar_lea.vmem %s2649_s11, 128  ;;  %s2481_s28 = smov [#allocation2]  }
  0x4e   : > { %p2423_p4 = scmp.ne.s32.totalorder %s2649_s11, %s2422_s21  ;;  %s2427_s29 = sshll.u32 %s2481_s28, 4  ;;  %s2428_s29 = int_to_ptr.vmem [resolvable:$false] %s2427_s29 }
  0x4f   : > { %s2429_s4 = scalar_lea.vmem %s2428_s29, 256  ;;  %p2430_p10 = scmp.lt.s32.totalorder %s2649_s11, %s2428_s29 }
  0x50   : > { %p2425_p5 = pnand %p2423_p4, %p2409_p11  ;;  %p2431_p12 = scmp.lt.s32.totalorder %s2429_s4, %s2422_s21 }
  0x52   : > { %p2426_p8 = pneg %p2425_p5  ;;  %p2432_p0 = por %p2431_p12, %p2430_p10 }
  0x54   : > { %p2433_p2 = pnand %p2432_p0, %p2426_p8 }
  0x56   : > { %2436 = shalt.err (!%p2433_p2)
}
  0x57   : > { %2172 = dma.hbm_to_vmem [thread:$0]  (!%p2645_p7), %s2643_s10, 128, %s2649_s11, %s2651_s15, %s2479_s5, %s2479_s5, %s2480_s6  }
  0x58   : > { %p2899_p11 = scmp.ne.s32.totalorder %s2896_s18, 0 }
  0x59   : > { %s180_s7 = sand.u32 (!%p2899_p11), 1, %s2467_s13   ;;  %p2900_p13 = scmp.ne.s32.totalorder (!%p2899_p11), %s2895_s17, 0 }
  0x5a   : > { %178 = sbr.rel (%p2899_p11) target bundleno = 4519 (0x11a7), region = 32  ;;  %s1868_s8 = sshll.u32 (!%p2899_p11), %s180_s7, 3 }
  0x5b   : > { %s181_s9 = scalar_lea.sflag (!%p2899_p11), [#allocation3], %s180_s7  ;;  %s184_s23 = scalar_lea.vmem (!%p2899_p11), [#allocation2], %s1868_s8 }
  0x61   : > { %2454 = dma.done.wait (%p2900_p13), %s181_s9, 128  }
  0x62   : > { %2456 = vsyncadd (%p2900_p13), %s181_s9, 4294967168  ;;  %p2901_p3 = scmp.eq.s32.totalorder %s2546_s16, 0 }
  0x64   : > { %2458 = dma.done.wait (%p2901_p3), [#allocation5], 512   ;;  %p2902_p6 = pmov %p2901_p3 }
  0x65   : > { %v2482_v0 = vmov 0.0   ;;  %vm2483_vm0 = vmmov 0   ;;  %v2314_v1 = vld [vmem:[#allocation6] sm:$0xff]   ;;  %v2315_v2 = vld [vmem:[#allocation6 + $0x8] sm:$0xff]   ;;  %v2317_v5 = vld [vmem:[#allocation4] sm:$0xff]   ;;  %vm242_vm1 = vcmask 261120   ;;  %v346_v25 = vlaneseq }
  0x66   : > { %2460 = vsyncadd (%p2902_p6), [#allocation5], 4294966784  ;;  %1968 = vmatprep.subr.bf16.mxu0 %v2482_v0  ;;  %1972 = vmatprep.mubr.msk.bf16.mxu0 %vm2483_vm0, %v2482_v0  ;;  %v219_v3 = vld [vmem:[%s184_s23] sm:$0xf]  ;;  %v220_v4 = vld [vmem:[%s184_s23 + $0x4] sm:$0xf] }
  0x67   : > { %1976 = vmatprep.subr.bf16.mxu1 %v2482_v0  ;;  %1980 = vmatprep.mubr.msk.bf16.mxu1 %vm2483_vm0, %v2482_v0  ;;  %v1872_v6 = vcombine.low %v219_v3, %v220_v4  ;;  %v2318_v7 = vld [vmem:[#allocation4 + $0x8] sm:$0xff]   ;;  %v2484_v8 = vmov 0.0|0.0   ;;  %vm349_vm2 = vcmask 31744   ;;  %s2485_s17 = smov 124   ;;  %v2732_v26 = vand.u32 127, %v346_v25  ;;  %s2486_s18 = smov 96  }
  0x68   : > { %1969 = vmatpush3.bf16.msra.mxu0 %v2314_v1  ;;  %1977 = vmatpush3.bf16.msra.mxu1 %v2317_v5  ;;  %vm2709_vm3 = vmpackc.low %vm349_vm2, %vm349_vm2  ;;  %vm430_vm5 = vcmask 124928   ;;  %s2487_s5 = smov 92   ;;  %s2488_s6 = smov 120   ;;  %vm448_vm6 = vcmask 130048   ;;  %vm1762_vm7 = vcmask 64512   ;;  %vm1764_vm8 = vcmask 97280  }
  0x69   : > { %1970 = vmatprep.subr.bf16.mxu0 %v2482_v0  ;;  %1978 = vmatprep.subr.bf16.mxu1 %v2482_v0  ;;  %vm348_vm4 = vcmp.lt.s32.totalorder %v2732_v26, 3  ;;  %s2489_s10 = smov 88   ;;  %s2490_s11 = smov 116   ;;  %vm1767_vm9 = vcmask 162816   ;;  %vm1769_vm10 = vcmask 195584   ;;  %vm1771_vm11 = vcmask 228352  }
  0x6a   : > { %s2491_s12 = smov 84   ;;  %s2492_s15 = smov 112   ;;  %vm1773_vm12 = vcmask 256000  }
  0x6b   : > { %s2493_s19 = smov 80   ;;  %s2494_s22 = smov 108  }
  0x6c   : > { %1971 = vmatpush3.bf16.msra.mxu0 %v2315_v2  ;;  %1979 = vmatpush3.bf16.msra.mxu1 %v2318_v7  ;;  %s2495_s24 = smov 76   ;;  %s2496_s20 = smov 104  }
  0x6d   : > { %2096 = vmatprep.subr.bf16.mxu0 %v2484_v8  ;;  %2100 = vmatprep.subr.bf16.mxu1 %v2484_v8  ;;  %s2497_s25 = smov 72   ;;  %s2498_s26 = smov 100  }
  0x6e   : > { %s2499_s21 = smov 12   ;;  %s2500_s28 = smov 68  }
  0x6f   : > { %1973 = vmatmul.mubr.msk.bf16.vlgmr.msra.gmra.mrb[0].mxu0 %vm242_vm1, %v1872_v6  ;;  %1981 = vmatmul.mubr.msk.bf16.vlgmr.msra.gmra.mrb[0].mxu1 %vm242_vm1, %v219_v3  ;;  %s2501_s29 = smov 4   ;;  %s2502_s4 = smov 8  }
  0x70   : > { %1988 = vmatprep.mubr.msk.f32.mxu0 %vm2483_vm0, %v2482_v0  ;;  %1995 = vmatprep.mubr.msk.f32.mxu1 %vm2483_vm0, %v2482_v0  ;;  %s2503_s7 = smov 16   ;;  %s2504_s8 = smov 20  }
  0x71   : > { %s2505_s9 = smov 24   ;;  %s2506_s23 = smov 28  }
  0x72   : > { %p214_p7 = scmp.lt.s32.totalorder %s2546_s16, 1 }
  0x74   : > { %s2910_s16 = smov (!%p214_p7, %s2546_s16), 1 }
 0x142   : > { %v280_v9 = vpop.f32.mrb[0].mxu0  ;;  %v2715_v16 = vpop.f32.mrb[0].mxu1 }
 0x143   : > { %v1974_v10 = vpop.f32.mrb[1].mxu0  ;;  %v1982_v17 = vpop.f32.mrb[1].mxu1 }
 0x144   : > { %v283_v11 = vpop.f32.mrb[2].mxu0  ;;  %v343_v18 = vpop.f32.mrb[2].mxu1 }
 0x145   : > { %v1975_v13 = vpop.f32.mrb[3].mxu0  ;;  %v2713_v14 = vpack.i.bf16 %v283_v11, %v280_v9  ;;  %v2097_v15 = vpack.c.bf16 %v283_v11, %v280_v9  ;;  %v1983_v19 = vpop.f32.mrb[3].mxu1 }
 0x147   : > { %2240 = vrot.lane.b32.xlu0 %v2713_v14, %s2485_s17  ;;  %2099 = vmatpush3.bf16.xpose.msk.msra.mxu0 %vm2709_vm3, %v2097_v15 }
 0x148   : > { %2103 = vmatprep.subr.bf16.mxu0 %v2484_v8 }
 0x14b   : > { %522 = vrot.lane.b32.xlu0 %v2715_v16, %s2485_s17  ;;  %s1871_s17 = sshll.u32 %s2910_s16, 2 }
 0x14e   : > { %1989 = vmatmul.mubr.msk.f32.vlgmr.msra.gmra.mrb[4].mxu0 %vm349_vm2, %v2715_v16 }
 0x14f   : > { %2002 = vmatprep.mubr.msk.f32.mxu0 %vm2483_vm0, %v2482_v0 }
 0x1b9   : > { %v2241_v20 = vpop.permute.xlu0 %2240 }
 0x1ba   : > { %v2243_v21 = vunpack.i.h.bf16 %v2241_v20  ;;  %v2242_v22 = vunpack.i.l.bf16 %v2241_v20 }
 0x1bc   : > { %v2104_v23 = vpack.c.bf16 %v2243_v21, %v2242_v22 }
 0x1bd   : > { %v523_v24 = vpop.permute.xlu0 %522 }
 0x1be   : > { %2106 = vmatpush3.bf16.xpose.msk.msra.mxu0 %vm2709_vm3, %v2104_v23 }
 0x1bf   : > { %2114 = vmatprep.subr.bf16.mxu0 %v2484_v8 }
 0x1c5   : > { %2003 = vmatmul.mubr.msk.f32.vlgmr.msra.gmra.mrb[6].mxu0 %vm349_vm2, %v523_v24 }
 0x1c6   : > { %2023 = vmatprep.mubr.msk.f32.mxu0 %vm2483_vm0, %v2482_v0 }
 0x221   : > { %v425_v27 = vpop.f32.mrb[4].mxu0 }
 0x222   : > { %v429_v28 = vsel %vm348_vm4, -1e+30, %v425_v27  ;;  %v1990_v29 = vpop.f32.mrb[5].mxu0 }
 0x223   : > { %v431_v30 = vsel %vm430_vm5, %v429_v28, -inf }
 0x224   : > { %432 = vmax.xlane.f32.xlu1 %v431_v30 }
 0x298   : > { %v600_v31 = vpop.f32.mrb[6].mxu0 }
 0x299   : > { %v604_v32 = vsel %vm348_vm4, -1e+30, %v600_v31  ;;  %v2004_v33 = vpop.f32.mrb[7].mxu0 }
 0x29a   : > { %v605_v34 = vsel %vm430_vm5, %v604_v32, -inf }
 0x29b   : > { %606 = vmax.xlane.f32.xlu1 %v605_v34 }
 0x2ac   : > { %2245 = vrot.lane.b32.xlu1 %v2713_v14, %s2486_s18 }
 0x2b0   : > { %2250 = vrot.lane.b32.xlu1 %v2713_v14, %s2487_s5 }
 0x2b1   : > { %v433_v35 = vpop.xlane.xlu1 %432 }
 0x2b2   : > { %v434_v36 = vsub.f32 %v429_v28, %v433_v35 }
 0x2b4   : > { %v435_v37 = vmul.f32 1.442695, %v434_v36  ;;  %2255 = vrot.lane.b32.xlu1 %v2713_v14, %s2488_s6 }
 0x2b6   : > { %2319 = vpow2.f32 %v435_v37 }
 0x2c0   : > { %v2320_v38 = vpop.eup %2319 }
 0x2c1   : > { %v437_v39 = vsel %vm430_vm5, %v2320_v38, 0.0 }
 0x2c2   : > { %438 = vadd.xlane.f32.xlu0 %v437_v39 }
 0x328   : > { %v607_v40 = vpop.xlane.xlu1 %606 }
 0x329   : > { %v608_v41 = vsub.f32 %v604_v32, %v607_v40 }
 0x32b   : > { %v609_v42 = vmul.f32 1.442695, %v608_v41 }
 0x32c   : > { %v2246_v43 = vpop.permute.xlu1 %2245 }
 0x32d   : > { %2321 = vpow2.f32 %v609_v42  ;;  %v2248_v44 = vunpack.i.h.bf16 %v2246_v43  ;;  %v2247_v45 = vunpack.i.l.bf16 %v2246_v43 }
 0x32f   : > { %v2101_v46 = vpack.c.bf16 %v2248_v44, %v2247_v45 }
 0x330   : > { %v2251_v50 = vpop.permute.xlu1 %2250 }
 0x331   : > { %2102 = vmatpush3.bf16.msra.mxu1 %v2101_v46  ;;  %v2253_v51 = vunpack.i.h.bf16 %v2251_v50  ;;  %v2252_v52 = vunpack.i.l.bf16 %v2251_v50 }
 0x332   : > { %2107 = vmatprep.subr.bf16.mxu1 %v2484_v8 }
 0x333   : > { %v2108_v55 = vpack.c.bf16 %v2253_v51, %v2252_v52 }
 0x334   : > { %v2256_v56 = vpop.permute.xlu1 %2255 }
 0x335   : > { %v2258_v58 = vunpack.i.h.bf16 %v2256_v56  ;;  %v2257_v59 = vunpack.i.l.bf16 %v2256_v56 }
 0x337   : > { %v2322_v47 = vpop.eup %2321  ;;  %v2111_v62 = vpack.c.bf16 %v2258_v58, %v2257_v59 }
 0x338   : > { %v611_v48 = vsel %vm430_vm5, %v2322_v47, 0.0 }
 0x339   : > { %612 = vadd.xlane.f32.xlu1 %v611_v48 }
 0x34a   : > { %695 = vrot.lane.b32.xlu1 %v2715_v16, %s2488_s6  ;;  %s217_s6 = scalar_lea.vmem %s2891_s3, %s1871_s17 }
 0x34f   : > { %v439_v49 = vpop.xlane.xlu0 %438 }
 0x350   : > { %2323 = vrcp.f32 %v439_v49 }
 0x35a   : > { %v2324_v53 = vpop.eup %2323 }
 0x35b   : > { %v441_v54 = vmul.f32 %v2324_v53, %v2320_v38 }
 0x35d   : > { %1996 = vmatmul.mubr.msk.f32.vlgmr.msra.gmra.mrb[4].mxu1 %vm448_vm6, %v441_v54 }
 0x35e   : > { %2109 = vmatpush3.bf16.msra.mxu1 %v2108_v55  ;;  %2009 = vmatprep.mubr.msk.f32.mxu1 %vm2483_vm0, %v2482_v0 }
 0x35f   : > { %2110 = vmatprep.subr.bf16.mxu1 %v2484_v8 }
 0x3c6   : > { %v613_v57 = vpop.xlane.xlu1 %612 }
 0x3c7   : > { %2325 = vrcp.f32 %v613_v57 }
 0x3ca   : > { %v696_v63 = vpop.permute.xlu1 %695 }
 0x3d1   : > { %v2326_v60 = vpop.eup %2325 }
 0x3d2   : > { %v615_v61 = vmul.f32 %v2326_v60, %v2322_v47 }
 0x3d4   : > { %2010 = vmatmul.mubr.msk.f32.vlgmr.msra.gmra.mrb[6].mxu1 %vm448_vm6, %v615_v61 }
 0x3d5   : > { %2113 = vmatpush3.bf16.xpose.msk.msra.mxu1 %vm2709_vm3, %v2111_v62  ;;  %2016 = vmatprep.mubr.msk.f32.mxu1 %vm2483_vm0, %v2482_v0 }
 0x3d6   : > { %2121 = vmatprep.subr.bf16.mxu1 %v2484_v8 }
 0x3dc   : > { %2017 = vmatmul.mubr.msk.f32.vlgmr.msra.gmra.mrb[8].mxu1 %vm349_vm2, %v696_v63 }
 0x3dd   : > { %2037 = vmatprep.mubr.msk.f32.mxu1 %vm2483_vm0, %v2482_v0 }
 0x430   : > { %v2761_v1 = vpop.f32.mrb[4].mxu1 }
 0x431   : > { %v1997_v2 = vpop.f32.mrb[5].mxu1 }
 0x4a7   : > { %v2763_v3 = vpop.f32.mrb[6].mxu1 }
 0x4a8   : > { %v2011_v4 = vpop.f32.mrb[7].mxu1 }
 0x4af   : > { %v773_v5 = vpop.f32.mrb[8].mxu1 }
 0x4b0   : > { %v777_v6 = vsel %vm348_vm4, -1e+30, %v773_v5  ;;  %v2018_v7 = vpop.f32.mrb[9].mxu1 }
 0x4b1   : > { %v778_v9 = vsel %vm430_vm5, %v777_v6, -inf }
 0x4b2   : > { %779 = vmax.xlane.f32.xlu0 %v778_v9 }
 0x4c8   : > { %2260 = vrot.lane.b32.xlu0 %v2713_v14, %s2489_s10 }
 0x4cc   : > { %2265 = vrot.lane.b32.xlu0 %v2713_v14, %s2490_s11 }
 0x4d0   : > { %868 = vrot.lane.b32.xlu0 %v2715_v16, %s2490_s11 }
 0x53f   : > { %v780_v10 = vpop.xlane.xlu0 %779 }
 0x540   : > { %v781_v11 = vsub.f32 %v777_v6, %v780_v10 }
 0x542   : > { %v782_v13 = vmul.f32 1.442695, %v781_v11 }
 0x543   : > { %v2261_v15 = vpop.permute.xlu0 %2260 }
 0x544   : > { %2327 = vpow2.f32 %v782_v13  ;;  %v2263_v17 = vunpack.i.h.bf16 %v2261_v15  ;;  %v2262_v18 = vunpack.i.l.bf16 %v2261_v15 }
 0x546   : > { %v2115_v19 = vpack.c.bf16 %v2263_v17, %v2262_v18 }
 0x547   : > { %v2266_v27 = vpop.permute.xlu0 %2265 }
 0x548   : > { %2116 = vmatpush3.bf16.msra.mxu0 %v2115_v19  ;;  %v2268_v29 = vunpack.i.h.bf16 %v2266_v27  ;;  %v2267_v30 = vunpack.i.l.bf16 %v2266_v27 }
 0x549   : > { %2117 = vmatprep.subr.bf16.mxu0 %v2484_v8 }
 0x54a   : > { %v2118_v33 = vpack.c.bf16 %v2268_v29, %v2267_v30 }
 0x54b   : > { %v869_v34 = vpop.permute.xlu0 %868 }
 0x54e   : > { %v2328_v20 = vpop.eup %2327 }
 0x54f   : > { %v784_v21 = vsel %vm430_vm5, %v2328_v20, 0.0 }
 0x550   : > { %785 = vadd.xlane.f32.xlu1 %v784_v21 }
 0x561   : > { %2270 = vrot.lane.b32.xlu1 %v2713_v14, %s2491_s12 }
 0x565   : > { %2275 = vrot.lane.b32.xlu1 %v2713_v14, %s2492_s15 }
 0x5dd   : > { %v786_v22 = vpop.xlane.xlu1 %785 }
 0x5de   : > { %2329 = vrcp.f32 %v786_v22 }
 0x5e1   : > { %v2271_v23 = vpop.permute.xlu1 %2270 }
 0x5e2   : > { %v2273_v24 = vunpack.i.h.bf16 %v2271_v23  ;;  %v2272_v25 = vunpack.i.l.bf16 %v2271_v23 }
 0x5e4   : > { %v2122_v28 = vpack.c.bf16 %v2273_v24, %v2272_v25 }
 0x5e5   : > { %v2276_v46 = vpop.permute.xlu1 %2275 }
 0x5e6   : > { %2123 = vmatpush3.bf16.msra.mxu1 %v2122_v28  ;;  %v2278_v48 = vunpack.i.h.bf16 %v2276_v46  ;;  %v2277_v49 = vunpack.i.l.bf16 %v2276_v46 }
 0x5e7   : > { %2124 = vmatprep.subr.bf16.mxu1 %v2484_v8 }
 0x5e8   : > { %v2330_v31 = vpop.eup %2329  ;;  %v2125_v52 = vpack.c.bf16 %v2278_v48, %v2277_v49 }
 0x5e9   : > { %v788_v32 = vmul.f32 %v2330_v31, %v2328_v20 }
 0x5eb   : > { %2024 = vmatmul.mubr.msk.f32.vlgmr.msra.gmra.mrb[8].mxu0 %vm448_vm6, %v788_v32 }
 0x5ec   : > { %2120 = vmatpush3.bf16.xpose.msk.msra.mxu0 %vm2709_vm3, %v2118_v33  ;;  %2030 = vmatprep.mubr.msk.f32.mxu0 %vm2483_vm0, %v2482_v0 }
 0x5ed   : > { %2128 = vmatprep.subr.bf16.mxu0 %v2484_v8 }
 0x5f3   : > { %2031 = vmatmul.mubr.msk.f32.vlgmr.msra.gmra.mrb[10].mxu0 %vm349_vm2, %v869_v34 }
 0x5f4   : > { %2051 = vmatprep.mubr.msk.f32.mxu0 %vm2483_vm0, %v2482_v0 }
 0x6be   : > { %v2786_v35 = vpop.f32.mrb[8].mxu0 }
 0x6bf   : > { %v2025_v36 = vpop.f32.mrb[9].mxu0 }
 0x6c6   : > { %v946_v37 = vpop.f32.mrb[10].mxu0 }
 0x6c7   : > { %v950_v38 = vsel %vm348_vm4, -1e+30, %v946_v37  ;;  %v2032_v39 = vpop.f32.mrb[11].mxu0 }
 0x6c8   : > { %v951_v40 = vsel %vm430_vm5, %v950_v38, -inf }
 0x6c9   : > { %952 = vmax.xlane.f32.xlu0 %v951_v40 }
 0x756   : > { %v953_v41 = vpop.xlane.xlu0 %952 }
 0x757   : > { %v954_v42 = vsub.f32 %v950_v38, %v953_v41 }
 0x759   : > { %v955_v43 = vmul.f32 1.442695, %v954_v42 }
 0x75b   : > { %2331 = vpow2.f32 %v955_v43 }
 0x765   : > { %v2332_v44 = vpop.eup %2331 }
 0x766   : > { %v957_v45 = vsel %vm430_vm5, %v2332_v44, 0.0 }
 0x767   : > { %958 = vadd.xlane.f32.xlu1 %v957_v45 }
 0x778   : > { %1041 = vrot.lane.b32.xlu1 %v2715_v16, %s2492_s15 }
 0x7f4   : > { %v959_v47 = vpop.xlane.xlu1 %958 }
 0x7f5   : > { %2333 = vrcp.f32 %v959_v47 }
 0x7f8   : > { %v1042_v53 = vpop.permute.xlu1 %1041 }
 0x7ff   : > { %v2334_v50 = vpop.eup %2333 }
 0x800   : > { %v961_v51 = vmul.f32 %v2334_v50, %v2332_v44 }
 0x802   : > { %2038 = vmatmul.mubr.msk.f32.vlgmr.msra.gmra.mrb[10].mxu1 %vm448_vm6, %v961_v51 }
 0x803   : > { %2127 = vmatpush3.bf16.xpose.msk.msra.mxu1 %vm2709_vm3, %v2125_v52  ;;  %2044 = vmatprep.mubr.msk.f32.mxu1 %vm2483_vm0, %v2482_v0 }
 0x804   : > { %2135 = vmatprep.subr.bf16.mxu1 %v2484_v8 }
 0x80a   : > { %2045 = vmatmul.mubr.msk.f32.vlgmr.msra.gmra.mrb[12].mxu1 %vm349_vm2, %v1042_v53 }
 0x80b   : > { %2065 = vmatprep.mubr.msk.f32.mxu1 %vm2483_vm0, %v2482_v0 }
 0x8d5   : > { %v2803_v54 = vpop.f32.mrb[10].mxu1 }
 0x8d6   : > { %v2039_v55 = vpop.f32.mrb[11].mxu1 }
 0x8dd   : > { %v1119_v56 = vpop.f32.mrb[12].mxu1 }
 0x8de   : > { %v1123_v57 = vsel %vm348_vm4, -1e+30, %v1119_v56  ;;  %v2046_v58 = vpop.f32.mrb[13].mxu1 }
 0x8df   : > { %v1124_v59 = vsel %vm430_vm5, %v1123_v57, -inf }
 0x8e0   : > { %1125 = vmax.xlane.f32.xlu0 %v1124_v59 }
 0x8f6   : > { %2280 = vrot.lane.b32.xlu0 %v2713_v14, %s2493_s19 }
 0x8fa   : > { %2285 = vrot.lane.b32.xlu0 %v2713_v14, %s2494_s22 }
 0x8fe   : > { %1214 = vrot.lane.b32.xlu0 %v2715_v16, %s2494_s22 }
 0x96d   : > { %v1126_v60 = vpop.xlane.xlu0 %1125 }
 0x96e   : > { %v1127_v61 = vsub.f32 %v1123_v57, %v1126_v60 }
 0x970   : > { %v1128_v62 = vmul.f32 1.442695, %v1127_v61 }
 0x971   : > { %v2281_v63 = vpop.permute.xlu0 %2280 }
 0x972   : > { %2335 = vpow2.f32 %v1128_v62  ;;  %v2283_v2 = vunpack.i.h.bf16 %v2281_v63  ;;  %v2282_v4 = vunpack.i.l.bf16 %v2281_v63 }
 0x974   : > { %v2129_v5 = vpack.c.bf16 %v2283_v2, %v2282_v4 }
 0x975   : > { %v2286_v15 = vpop.permute.xlu0 %2285 }
 0x976   : > { %2130 = vmatpush3.bf16.msra.mxu0 %v2129_v5  ;;  %v2288_v18 = vunpack.i.h.bf16 %v2286_v15  ;;  %v2287_v19 = vunpack.i.l.bf16 %v2286_v15 }
 0x977   : > { %2131 = vmatprep.subr.bf16.mxu0 %v2484_v8 }
 0x978   : > { %v2132_v22 = vpack.c.bf16 %v2288_v18, %v2287_v19 }
 0x979   : > { %v1215_v23 = vpop.permute.xlu0 %1214 }
 0x97c   : > { %v2336_v6 = vpop.eup %2335 }
 0x97d   : > { %v1130_v7 = vsel %vm430_vm5, %v2336_v6, 0.0 }
 0x97e   : > { %1131 = vadd.xlane.f32.xlu1 %v1130_v7 }
 0x98f   : > { %2290 = vrot.lane.b32.xlu1 %v2713_v14, %s2495_s24 }
 0x993   : > { %2295 = vrot.lane.b32.xlu1 %v2713_v14, %s2496_s20 }
 0xa0b   : > { %v1132_v9 = vpop.xlane.xlu1 %1131 }
 0xa0c   : > { %2337 = vrcp.f32 %v1132_v9 }
 0xa0f   : > { %v2291_v10 = vpop.permute.xlu1 %2290 }
 0xa10   : > { %v2293_v11 = vunpack.i.h.bf16 %v2291_v10  ;;  %v2292_v13 = vunpack.i.l.bf16 %v2291_v10 }
 0xa12   : > { %v2136_v17 = vpack.c.bf16 %v2293_v11, %v2292_v13 }
 0xa13   : > { %v2296_v37 = vpop.permute.xlu1 %2295 }
 0xa14   : > { %2137 = vmatpush3.bf16.msra.mxu1 %v2136_v17  ;;  %v2298_v39 = vunpack.i.h.bf16 %v2296_v37  ;;  %v2297_v40 = vunpack.i.l.bf16 %v2296_v37 }
 0xa15   : > { %2138 = vmatprep.subr.bf16.mxu1 %v2484_v8 }
 0xa16   : > { %v2338_v20 = vpop.eup %2337  ;;  %v2139_v43 = vpack.c.bf16 %v2298_v39, %v2297_v40 }
 0xa17   : > { %v1134_v21 = vmul.f32 %v2338_v20, %v2336_v6 }
 0xa19   : > { %2052 = vmatmul.mubr.msk.f32.vlgmr.msra.gmra.mrb[12].mxu0 %vm448_vm6, %v1134_v21 }
 0xa1a   : > { %2134 = vmatpush3.bf16.xpose.msk.msra.mxu0 %vm2709_vm3, %v2132_v22  ;;  %2058 = vmatprep.mubr.msk.f32.mxu0 %vm2483_vm0, %v2482_v0 }
 0xa1b   : > { %2142 = vmatprep.subr.bf16.mxu0 %v2484_v8 }
 0xa21   : > { %2059 = vmatmul.mubr.msk.f32.vlgmr.msra.gmra.mrb[14].mxu0 %vm349_vm2, %v1215_v23 }
 0xa22   : > { %2079 = vmatprep.mubr.msk.f32.mxu0 %vm2483_vm0, %v2482_v0 }
 0xaec   : > { %v2826_v24 = vpop.f32.mrb[12].mxu0 }
 0xaed   : > { %v2053_v25 = vpop.f32.mrb[13].mxu0 }
 0xaf4   : > { %v1292_v27 = vpop.f32.mrb[14].mxu0 }
 0xaf5   : > { %v1296_v28 = vsel %vm348_vm4, -1e+30, %v1292_v27  ;;  %v2060_v29 = vpop.f32.mrb[15].mxu0 }
 0xaf6   : > { %v1297_v30 = vsel %vm430_vm5, %v1296_v28, -inf }
 0xaf7   : > { %1298 = vmax.xlane.f32.xlu0 %v1297_v30 }
 0xb84   : > { %v1299_v31 = vpop.xlane.xlu0 %1298 }
 0xb85   : > { %v1300_v32 = vsub.f32 %v1296_v28, %v1299_v31 }
 0xb87   : > { %v1301_v33 = vmul.f32 1.442695, %v1300_v32 }
 0xb89   : > { %2339 = vpow2.f32 %v1301_v33 }
 0xb93   : > { %v2340_v34 = vpop.eup %2339 }
 0xb94   : > { %v1303_v36 = vsel %vm430_vm5, %v2340_v34, 0.0 }
 0xb95   : > { %1304 = vadd.xlane.f32.xlu1 %v1303_v36 }
 0xba6   : > { %1387 = vrot.lane.b32.xlu1 %v2715_v16, %s2496_s20 }
 0xc22   : > { %v1305_v38 = vpop.xlane.xlu1 %1304 }
 0xc23   : > { %2341 = vrcp.f32 %v1305_v38 }
 0xc26   : > { %v1388_v44 = vpop.permute.xlu1 %1387 }
 0xc2d   : > { %v2342_v41 = vpop.eup %2341 }
 0xc2e   : > { %v1307_v42 = vmul.f32 %v2342_v41, %v2340_v34 }
 0xc30   : > { %2066 = vmatmul.mubr.msk.f32.vlgmr.msra.gmra.mrb[14].mxu1 %vm448_vm6, %v1307_v42 }
 0xc31   : > { %2141 = vmatpush3.bf16.xpose.msk.msra.mxu1 %vm2709_vm3, %v2139_v43  ;;  %2072 = vmatprep.mubr.msk.f32.mxu1 %vm2483_vm0, %v2482_v0 }
 0xc32   : > { %2149 = vmatprep.subr.bf16.mxu1 %v2484_v8 }
 0xc38   : > { %2073 = vmatmul.mubr.msk.f32.vlgmr.msra.gmra.mrb[16].mxu1 %vm349_vm2, %v1388_v44 }
 0xc39   : > { %2093 = vmatprep.mubr.msk.f32.mxu1 %vm2483_vm0, %v2482_v0 }
 0xd03   : > { %v1383_v45 = vpop.f32.mrb[14].mxu1 }
 0xd04   : > { %v2067_v46 = vpop.f32.mrb[15].mxu1 }
 0xd0b   : > { %v1465_v47 = vpop.f32.mrb[16].mxu1 }
 0xd0c   : > { %v1469_v48 = vsel %vm348_vm4, -1e+30, %v1465_v47  ;;  %v2074_v49 = vpop.f32.mrb[17].mxu1 }
 0xd0d   : > { %v1470_v50 = vsel %vm430_vm5, %v1469_v48, -inf }
 0xd0e   : > { %1471 = vmax.xlane.f32.xlu0 %v1470_v50 }
 0xd24   : > { %2300 = vrot.lane.b32.xlu0 %v2713_v14, %s2497_s25 }
 0xd28   : > { %2305 = vrot.lane.b32.xlu0 %v2713_v14, %s2498_s26 }
 0xd2c   : > { %1560 = vrot.lane.b32.xlu0 %v2715_v16, %s2498_s26 }
 0xd9b   : > { %v1472_v51 = vpop.xlane.xlu0 %1471 }
 0xd9c   : > { %v1473_v52 = vsub.f32 %v1469_v48, %v1472_v51 }
 0xd9e   : > { %v1474_v53 = vmul.f32 1.442695, %v1473_v52 }
 0xd9f   : > { %v2301_v55 = vpop.permute.xlu0 %2300 }
 0xda0   : > { %2343 = vpow2.f32 %v1474_v53  ;;  %v2303_v56 = vunpack.i.h.bf16 %v2301_v55  ;;  %v2302_v57 = vunpack.i.l.bf16 %v2301_v55 }
 0xda2   : > { %v2143_v58 = vpack.c.bf16 %v2303_v56, %v2302_v57 }
 0xda3   : > { %v2306_v62 = vpop.permute.xlu0 %2305 }
 0xda4   : > { %2144 = vmatpush3.bf16.msra.mxu0 %v2143_v58  ;;  %v2308_v63 = vunpack.i.h.bf16 %v2306_v62  ;;  %v2307_v16 = vunpack.i.l.bf16 %v2306_v62 }
 0xda5   : > { %2145 = vmatprep.subr.bf16.mxu0 %v2484_v8 }
 0xda6   : > { %v2146_v5 = vpack.c.bf16 %v2308_v63, %v2307_v16 }
 0xda7   : > { %v1561_v8 = vpop.permute.xlu0 %1560 }
 0xdaa   : > { %v2344_v59 = vpop.eup %2343 }
 0xdab   : > { %v1476_v60 = vsel %vm430_vm5, %v2344_v59, 0.0 }
 0xdac   : > { %1477 = vadd.xlane.f32.xlu1 %v1476_v60 }
 0xe39   : > { %v1478_v61 = vpop.xlane.xlu1 %1477 }
 0xe3a   : > { %2345 = vrcp.f32 %v1478_v61 }
 0xe44   : > { %v2346_v2 = vpop.eup %2345 }
 0xe45   : > { %v1480_v4 = vmul.f32 %v2346_v2, %v2344_v59 }
 0xe47   : > { %2080 = vmatmul.mubr.msk.f32.vlgmr.msra.gmra.mrb[16].mxu0 %vm448_vm6, %v1480_v4 }
 0xe48   : > { %2148 = vmatpush3.bf16.xpose.msk.msra.mxu0 %vm2709_vm3, %v2146_v5  ;;  %2086 = vmatprep.mubr.msk.f32.mxu0 %vm2483_vm0, %v2482_v0 }
 0xe4f   : > { %2087 = vmatmul.mubr.msk.f32.vlgmr.msra.gmra.mrb[18].mxu0 %vm349_vm2, %v1561_v8 }
 0xf1a   : > { %v1556_v6 = vpop.f32.mrb[16].mxu0 }
 0xf1b   : > { %v2081_v7 = vpop.f32.mrb[17].mxu0 }
 0xf22   : > { %v1638_v9 = vpop.f32.mrb[18].mxu0 }
 0xf23   : > { %v1642_v10 = vsel %vm348_vm4, -1e+30, %v1638_v9  ;;  %v2088_v11 = vpop.f32.mrb[19].mxu0 }
 0xf24   : > { %v1643_v13 = vsel %vm430_vm5, %v1642_v10, -inf }
 0xf25   : > { %1644 = vmax.xlane.f32.xlu0 %v1643_v13 }
 0xf3b   : > { %1742 = vrot.lane.b32.xlu0 %v2803_v54, %s2499_s21 }
 0xfb2   : > { %v1645_v12 = vpop.xlane.xlu0 %1644 }
 0xfb3   : > { %v1646_v15 = vsub.f32 %v1642_v10, %v1645_v12 }
 0xfb5   : > { %v1647_v17 = vmul.f32 1.442695, %v1646_v15 }
 0xfb6   : > { %v1743_v30 = vpop.permute.xlu0 %1742 }
 0xfb7   : > { %2347 = vpow2.f32 %v1647_v17 }
 0xfc1   : > { %v2348_v0 = vpop.eup %2347 }
 0xfc2   : > { %v1649_v18 = vsel %vm430_vm5, %v2348_v0, 0.0 }
 0xfc3   : > { %1650 = vadd.xlane.f32.xlu1 %v1649_v18 }
 0xfd4   : > { %2310 = vrot.lane.b32.xlu1 %v2713_v14, %s2500_s28 }
 0xfd8   : > { %1734 = vrot.lane.b32.xlu1 %v2763_v3, %s2501_s29 }
 0xfdc   : > { %1738 = vrot.lane.b32.xlu1 %v2786_v35, %s2502_s4 }
 0xfe0   : > { %1746 = vrot.lane.b32.xlu1 %v2826_v24, %s2503_s7 }
 0xfe4   : > { %1750 = vrot.lane.b32.xlu1 %v1383_v45, %s2504_s8 }
 0xfe8   : > { %1754 = vrot.lane.b32.xlu1 %v1556_v6, %s2505_s9 }
0x1050   : > { %v1651_v26 = vpop.xlane.xlu1 %1650 }
0x1051   : > { %2349 = vrcp.f32 %v1651_v26 }
0x1054   : > { %v2311_v54 = vpop.permute.xlu1 %2310 }
0x1055   : > { %v2313_v19 = vunpack.i.h.bf16 %v2311_v54  ;;  %v2312_v20 = vunpack.i.l.bf16 %v2311_v54 }
0x1057   : > { %v2150_v14 = vpack.c.bf16 %v2313_v19, %v2312_v20 }
0x1058   : > { %v1735_v23 = vpop.permute.xlu1 %1734 }
0x1059   : > { %2151 = vmatpush3.bf16.msra.mxu1 %v2150_v14  ;;  %v1761_v28 = vsel %vm349_vm2, %v2761_v1, %v1735_v23 }
0x105b   : > { %v2350_v3 = vpop.eup %2349 }
0x105c   : > { %v1653_v21 = vmul.f32 %v2350_v3, %v2348_v0  ;;  %v1739_v24 = vpop.permute.xlu1 %1738 }
0x105d   : > { %v1763_v29 = vsel %vm1762_vm7, %v1761_v28, %v1739_v24 }
0x105e   : > { %2094 = vmatmul.mubr.msk.f32.vlgmr.msra.gmra.mrb[18].mxu1 %vm448_vm6, %v1653_v21  ;;  %v1765_v32 = vsel %vm1764_vm8, %v1763_v29, %v1743_v30 }
0x1060   : > { %v1747_v25 = vpop.permute.xlu1 %1746 }
0x1061   : > { %v1766_v33 = vsel %vm448_vm6, %v1765_v32, %v1747_v25 }
0x1064   : > { %v1751_v27 = vpop.permute.xlu1 %1750 }
0x1065   : > { %v1768_v34 = vsel %vm1767_vm9, %v1766_v33, %v1751_v27 }
0x1068   : > { %v1755_v31 = vpop.permute.xlu1 %1754 }
0x1069   : > { %v1770_v36 = vsel %vm1769_vm10, %v1768_v34, %v1755_v31 }
0x1131   : > { %v1729_v35 = vpop.f32.mrb[18].mxu1 }
0x1132   : > { %1758 = vrot.lane.b32.xlu1 %v1729_v35, %s2506_s23  ;;  %v2095_v22 = vpop.f32.mrb[19].mxu1 }
0x11a4   : > { %v1759_v37 = vpop.permute.xlu1 %1758 }
0x11a5   : > { %v1772_v1 = vsel %vm1771_vm11, %v1770_v36, %v1759_v37 }
0x11a6   : > { %1774 = vst.msk [vmem:[%s217_s6] sm:$0x7] %vm1773_vm12, %v1772_v1 }
0x11a7 PF: > { %p14_p9 = scmp.ge.s32.totalorder %s2626_s27, 4   ;;  %s2905_s12 = smov %s2467_s13 }
0x11a8   : > { %s2906_s13 = smov %s2471_s14  ;;  %s2907_s14 = smov %s2637_s30 }
0x11a9   : > { %s2908_s15 = smov %s2626_s27  ;;  %16 = sbr.rel (!%p14_p9) target bundleno = 4 (0x4), region = 80 }
0x11b0   :  { %1794 = vsyncpa [#allocation3], 1 }
0x11b1   :  { %1796 = vsyncpa [#allocation3 + $0x1], 1 }
0x11b2   :  { %1797 = vsyncpa [#allocation5], 1 }

</bundles_post_ra>
